<compile_context>
chip_gen: v7x
topology: tpu7x:2x2x1
jax: 0.10.0
libtpu: 0.0.40
codegen_flags: <defaults>
</compile_context>

<pallas_src>
import functools

import jax
import jax.numpy as jnp
from jax import lax
from jax.experimental import pallas as pl
from jax.experimental.pallas import tpu as pltpu

MARGIN = 0.3
REDUCTION = "mean"   # matches TripletLoss default
_EPS = 1e-12         # F.normalize eps


def _round_up(x, m):
    return ((x + m - 1) // m) * m


def _triplet_kernel(a_ref, p_ref, n_ref, out_ref, *, margin, valid_rows, tile_rows):
    # Native-dtype DMA (bf16 halves HBM bytes); upcast to f32 for the reductions.
    a = a_ref[...].astype(jnp.float32)
    p = p_ref[...].astype(jnp.float32)
    n = n_ref[...].astype(jnp.float32)

    # Dot-product form: 5 elementwise products + 5 lane reductions; no normalized /
    # difference full-tile temps.
    saa = jnp.sum(a * a, axis=1, keepdims=True)
    spp = jnp.sum(p * p, axis=1, keepdims=True)
    snn = jnp.sum(n * n, axis=1, keepdims=True)
    sap = jnp.sum(a * p, axis=1, keepdims=True)
    san = jnp.sum(a * n, axis=1, keepdims=True)

    # F.normalize eps: x / max(||x||, eps) == x * rsqrt(max(sumsq, eps^2)) (EUP slot).
    eps2 = jnp.float32(_EPS * _EPS)
    inva = lax.rsqrt(jnp.maximum(saa, eps2))
    invp = lax.rsqrt(jnp.maximum(spp, eps2))
    invn = lax.rsqrt(jnp.maximum(snn, eps2))

    # ||an - pn||^2 expanded; general form (not 2-2cos) to keep the eps-clamp semantics
    # for near-zero rows.
    pos = saa * inva * inva + spp * invp * invp - 2.0 * sap * inva * invp
    neg = saa * inva * inva + snn * invn * invn - 2.0 * san * inva * invn

    hinge = jnp.maximum(pos - neg + jnp.float32(margin), 0.0)

    # Tail-row mask for the ragged final batch tile.  jnp.where (select) rather than a
    # multiplicative mask: the auto-padded tail rows hold unspecified data (may be
    # NaN/Inf) and NaN*0 would poison the sums.
    row0 = pl.program_id(0) * tile_rows
    row_ids = row0 + lax.broadcasted_iota(jnp.int32, (tile_rows, 1), 0)
    valid = row_ids < valid_rows

    zero = jnp.zeros_like(hinge)
    loss_sum = jnp.sum(jnp.where(valid, hinge, zero))
    pos_sum = jnp.sum(jnp.where(valid, pos, zero))
    neg_sum = jnp.sum(jnp.where(valid, neg, zero))

    # Lane-dense (8,128) output slab (unmasked stores): sublane 0 -> loss sum,
    # 1 -> pos sum, 2 -> neg sum; value replicated across lanes, wrapper reads lane 0.
    sub = lax.broadcasted_iota(jnp.int32, (8, 128), 0)
    slab = jnp.where(sub == 0, loss_sum,
           jnp.where(sub == 1, pos_sum,
           jnp.where(sub == 2, neg_sum, 0.0)))
    out_ref[...] = slab[None, :, :]


def _vmem_capacity_bytes():
    try:
        info = pltpu.get_tpu_info()
        cap = getattr(info, "vmem_capacity_bytes", None)
        if cap:
            return int(cap)
    except Exception:
        pass
    return 64 * 1024 * 1024  # conservative fallback (v7x physical VMEM)


def triplet_loss(anchor, positive, negative, margin=MARGIN, reduction=REDUCTION):
    """anchor/positive/negative: (B, D) arrays (any float dtype). Returns f32 scalars."""
    B, D = anchor.shape
    itemsize = jnp.dtype(anchor.dtype).itemsize

    # Packed-sublane multiple for the batch tile (f32 -> 8, bf16 -> 16, int8/fp8 -> 32).
    row_mult = {4: 8, 2: 16, 1: 32}.get(itemsize, 8)

    # Generation-aware VMEM budget: ~75% of physical VMEM, capped at 96 MiB
    # (v5e/v6e: 128 MiB parts -> 96 MiB; v7x: 64 MiB parts -> 48 MiB).
    vmem_cap = _vmem_capacity_bytes()
    vmem_limit = min(vmem_cap * 3 // 4, 96 * 1024 * 1024)
    budget = vmem_limit * 4 // 5

    # Per-row footprint: 3 double-buffered native-dtype input blocks + a conservative
    # allowance for the in-kernel f32 temps of the dot-product formulation.
    bytes_per_row = D * (6 * itemsize + 24)
    tb = max(row_mult, budget // max(bytes_per_row, 1))
    tb = min(tb, 2048, _round_up(B, row_mult))
    TB = max(row_mult, (tb // row_mult) * row_mult)

    num_tiles = pl.cdiv(B, TB)

    kernel = functools.partial(
        _triplet_kernel, margin=float(margin), valid_rows=B, tile_rows=TB)

    # Full-extent feature dim (block dim == D): no wrapper-side pad/copy of the inputs.
    block_bytes = TB * D * itemsize
    if num_tiles > 2 and block_bytes < (1 << 20):
        # Small blocks (e.g. large D under the v7x VMEM budget): deepen input pipelining.
        in_spec = pl.BlockSpec((TB, D), lambda i: (i, 0), pipeline_mode=pl.Buffered(3))
    else:
        in_spec = pl.BlockSpec((TB, D), lambda i: (i, 0))
    out_spec = pl.BlockSpec((1, 8, 128), lambda i: (i, 0, 0))

    partials = pl.pallas_call(
        kernel,
        out_shape=jax.ShapeDtypeStruct((num_tiles, 8, 128), jnp.float32),
        grid=(num_tiles,),
        in_specs=[in_spec, in_spec, in_spec],
        out_specs=out_spec,
        compiler_params=pltpu.CompilerParams(
            dimension_semantics=("parallel",),
            vmem_limit_bytes=int(vmem_limit),
        ),
    )(anchor, positive, negative)

    # Tiny final reduction over per-tile partials in the surrounding XLA graph.
    totals = jnp.sum(partials, axis=0)        # (8, 128)
    loss_sum = totals[0, 0]
    pos_sum = totals[1, 0]
    neg_sum = totals[2, 0]

    b = jnp.float32(B)
    if reduction == "sum":
        loss = loss_sum
    else:
        # TODO(synk): reduction='none' should return the per-row loss vector; only the
        # scalar mean is emitted here (matches 'mean' behavior).
        loss = loss_sum / b

    return {
        "loss": loss,
        "positive_distance": pos_sum / b,
        "negative_distance": neg_sum / b,
    }


def _reference(anchor, positive, negative, margin=MARGIN, reduction=REDUCTION):
    def norm(x):
        n = jnp.sqrt(jnp.sum(x * x, axis=1, keepdims=True))
        return x / jnp.maximum(n, _EPS)
    a, p, n = norm(anchor), norm(positive), norm(negative)
    pd = jnp.sum((a - p) ** 2, axis=1)
    nd = jnp.sum((a - n) ** 2, axis=1)
    loss = jnp.maximum(pd - nd + margin, 0.0)
    loss = loss.mean() if reduction == "mean" else loss.sum()
    return {"loss": loss, "positive_distance": pd.mean(), "negative_distance": nd.mean()}


if __name__ == "__main__":
    key = jax.random.PRNGKey(0)

    # Case 1: batch a multiple of the tile multiple.
    k1, k2, k3, k4, k5, k6 = jax.random.split(key, 6)
    B, D = 8, 32
    anchor = jax.random.normal(k1, (B, D), dtype=jnp.float32)
    positive = jax.random.normal(k2, (B, D), dtype=jnp.float32)
    negative = jax.random.normal(k3, (B, D), dtype=jnp.float32)

    out = triplet_loss(anchor, positive, negative)
    jax.block_until_ready(out)
    ref = _reference(anchor, positive, negative)
    for k in ("loss", "positive_distance", "negative_distance"):
        assert jnp.allclose(out[k], ref[k], atol=1e-5, rtol=1e-5), (k, out[k], ref[k])

    # Case 2: ragged batch (exercises the in-kernel tail-row masking path).
    B2, D2 = 13, 32
    anchor2 = jax.random.normal(k4, (B2, D2), dtype=jnp.float32)
    positive2 = jax.random.normal(k5, (B2, D2), dtype=jnp.float32)
    negative2 = jax.random.normal(k6, (B2, D2), dtype=jnp.float32)

    out2 = triplet_loss(anchor2, positive2, negative2)
    jax.block_until_ready(out2)
    ref2 = _reference(anchor2, positive2, negative2)
    for k in ("loss", "positive_distance", "negative_distance"):
        assert jnp.allclose(out2[k], ref2[k], atol=1e-5, rtol=1e-5), (k, out2[k], ref2[k])

    print("KERNEL_OK")
</pallas_src>

<mosaic_0001>
module attributes {stable_mosaic.version = 11 : i64} {
  func.func @_triplet_kernel(%arg0: i32, %arg1: memref<8x32xf32, #tpu.memory_space<vmem>>, %arg2: memref<8x32xf32, #tpu.memory_space<vmem>>, %arg3: memref<8x32xf32, #tpu.memory_space<vmem>>, %arg4: memref<1x8x128xf32, #tpu.memory_space<vmem>>) attributes {dimension_semantics = [#tpu.dimension_semantics<parallel>], iteration_bounds = array<i64: 1>, scalar_prefetch = 0 : i64, scratch_operands = 0 : i64, tpu.core_type = #tpu.core_type<tc>, window_params = [{transform_indices = @transform_0, window_bounds = array<i64: 8, 32>}, {transform_indices = @transform_1, window_bounds = array<i64: 8, 32>}, {transform_indices = @transform_2, window_bounds = array<i64: 8, 32>}, {transform_indices = @transform_3, window_bounds = array<i64: 1, 8, 128>}]} {
    %c0 = arith.constant 0 : index
    %c0_0 = arith.constant 0 : index
    %0 = vector.load %arg1[%c0, %c0_0] : memref<8x32xf32, #tpu.memory_space<vmem>>, vector<8x32xf32>
    %c0_1 = arith.constant 0 : index
    %c0_2 = arith.constant 0 : index
    %1 = vector.load %arg2[%c0_1, %c0_2] : memref<8x32xf32, #tpu.memory_space<vmem>>, vector<8x32xf32>
    %c0_3 = arith.constant 0 : index
    %c0_4 = arith.constant 0 : index
    %2 = vector.load %arg3[%c0_3, %c0_4] : memref<8x32xf32, #tpu.memory_space<vmem>>, vector<8x32xf32>
    %3 = arith.mulf %0, %0 : vector<8x32xf32>
    %cst = arith.constant dense<0.000000e+00> : vector<8xf32>
    %4 = vector.multi_reduction <add>, %3, %cst [1] : vector<8x32xf32> to vector<8xf32>
    %5 = vector.shape_cast %4 : vector<8xf32> to vector<8x1xf32>
    %6 = arith.mulf %1, %1 : vector<8x32xf32>
    %cst_5 = arith.constant dense<0.000000e+00> : vector<8xf32>
    %7 = vector.multi_reduction <add>, %6, %cst_5 [1] : vector<8x32xf32> to vector<8xf32>
    %8 = vector.shape_cast %7 : vector<8xf32> to vector<8x1xf32>
    %9 = arith.mulf %2, %2 : vector<8x32xf32>
    %cst_6 = arith.constant dense<0.000000e+00> : vector<8xf32>
    %10 = vector.multi_reduction <add>, %9, %cst_6 [1] : vector<8x32xf32> to vector<8xf32>
    %11 = vector.shape_cast %10 : vector<8xf32> to vector<8x1xf32>
    %12 = arith.mulf %0, %1 : vector<8x32xf32>
    %cst_7 = arith.constant dense<0.000000e+00> : vector<8xf32>
    %13 = vector.multi_reduction <add>, %12, %cst_7 [1] : vector<8x32xf32> to vector<8xf32>
    %14 = vector.shape_cast %13 : vector<8xf32> to vector<8x1xf32>
    %15 = arith.mulf %0, %2 : vector<8x32xf32>
    %cst_8 = arith.constant dense<0.000000e+00> : vector<8xf32>
    %16 = vector.multi_reduction <add>, %15, %cst_8 [1] : vector<8x32xf32> to vector<8xf32>
    %17 = vector.shape_cast %16 : vector<8xf32> to vector<8x1xf32>
    %cst_9 = arith.constant 1.000000e-24 : f32
    %18 = vector.broadcast %cst_9 : f32 to vector<8x1xf32>
    %19 = arith.maximumf %5, %18 : vector<8x1xf32>
    %20 = math.rsqrt %19 : vector<8x1xf32>
    %cst_10 = arith.constant 1.000000e-24 : f32
    %21 = vector.broadcast %cst_10 : f32 to vector<8x1xf32>
    %22 = arith.maximumf %8, %21 : vector<8x1xf32>
    %23 = math.rsqrt %22 : vector<8x1xf32>
    %cst_11 = arith.constant 1.000000e-24 : f32
    %24 = vector.broadcast %cst_11 : f32 to vector<8x1xf32>
    %25 = arith.maximumf %11, %24 : vector<8x1xf32>
    %26 = math.rsqrt %25 : vector<8x1xf32>
    %27 = arith.mulf %5, %20 : vector<8x1xf32>
    %28 = arith.mulf %27, %20 : vector<8x1xf32>
    %29 = arith.mulf %8, %23 : vector<8x1xf32>
    %30 = arith.mulf %29, %23 : vector<8x1xf32>
    %31 = arith.addf %28, %30 : vector<8x1xf32>
    %cst_12 = arith.constant 2.000000e+00 : f32
    %32 = vector.broadcast %cst_12 : f32 to vector<8x1xf32>
    %33 = arith.mulf %32, %14 : vector<8x1xf32>
    %34 = arith.mulf %33, %20 : vector<8x1xf32>
    %35 = arith.mulf %34, %23 : vector<8x1xf32>
    %36 = arith.subf %31, %35 : vector<8x1xf32>
    %37 = arith.mulf %5, %20 : vector<8x1xf32>
    %38 = arith.mulf %37, %20 : vector<8x1xf32>
    %39 = arith.mulf %11, %26 : vector<8x1xf32>
    %40 = arith.mulf %39, %26 : vector<8x1xf32>
    %41 = arith.addf %38, %40 : vector<8x1xf32>
    %cst_13 = arith.constant 2.000000e+00 : f32
    %42 = vector.broadcast %cst_13 : f32 to vector<8x1xf32>
    %43 = arith.mulf %42, %17 : vector<8x1xf32>
    %44 = arith.mulf %43, %20 : vector<8x1xf32>
    %45 = arith.mulf %44, %26 : vector<8x1xf32>
    %46 = arith.subf %41, %45 : vector<8x1xf32>
    %47 = arith.subf %36, %46 : vector<8x1xf32>
    %cst_14 = arith.constant 3.000000e-01 : f32
    %48 = vector.broadcast %cst_14 : f32 to vector<8x1xf32>
    %49 = arith.addf %47, %48 : vector<8x1xf32>
    %cst_15 = arith.constant 0.000000e+00 : f32
    %50 = vector.broadcast %cst_15 : f32 to vector<8x1xf32>
    %51 = arith.maximumf %49, %50 : vector<8x1xf32>
    %c8_i32 = arith.constant 8 : i32
    %52 = arith.muli %arg0, %c8_i32 : i32
    %53 = tpu.iota {dimensions = array<i32: 0>} : vector<8x1xi32>
    %54 = vector.broadcast %52 : i32 to vector<8x1xi32>
    %55 = arith.addi %54, %53 : vector<8x1xi32>
    %c8_i32_16 = arith.constant 8 : i32
    %56 = vector.broadcast %c8_i32_16 : i32 to vector<8x1xi32>
    %57 = arith.cmpi slt, %55, %56 : vector<8x1xi32>
    %cst_17 = arith.constant 0.000000e+00 : f32
    %58 = vector.broadcast %cst_17 : f32 to vector<8x1xf32>
    %59 = arith.select %57, %51, %58 : vector<8x1xi1>, vector<8x1xf32>
    %60 = vector.shape_cast %59 : vector<8x1xf32> to vector<1x8x1xf32>
    %cst_18 = arith.constant dense<0.000000e+00> : vector<1xf32>
    %61 = vector.multi_reduction <add>, %60, %cst_18 [1, 2] : vector<1x8x1xf32> to vector<1xf32>
    %62 = vector.shape_cast %61 : vector<1xf32> to vector<1x1x1xf32>
    %63 = vector.extract %62[0, 0, 0] : f32 from vector<1x1x1xf32>
    %64 = arith.select %57, %36, %58 : vector<8x1xi1>, vector<8x1xf32>
    %65 = vector.shape_cast %64 : vector<8x1xf32> to vector<1x8x1xf32>
    %cst_19 = arith.constant dense<0.000000e+00> : vector<1xf32>
    %66 = vector.multi_reduction <add>, %65, %cst_19 [1, 2] : vector<1x8x1xf32> to vector<1xf32>
    %67 = vector.shape_cast %66 : vector<1xf32> to vector<1x1x1xf32>
    %68 = vector.extract %67[0, 0, 0] : f32 from vector<1x1x1xf32>
    %69 = arith.select %57, %46, %58 : vector<8x1xi1>, vector<8x1xf32>
    %70 = vector.shape_cast %69 : vector<8x1xf32> to vector<1x8x1xf32>
    %cst_20 = arith.constant dense<0.000000e+00> : vector<1xf32>
    %71 = vector.multi_reduction <add>, %70, %cst_20 [1, 2] : vector<1x8x1xf32> to vector<1xf32>
    %72 = vector.shape_cast %71 : vector<1xf32> to vector<1x1x1xf32>
    %73 = vector.extract %72[0, 0, 0] : f32 from vector<1x1x1xf32>
    %74 = tpu.iota {dimensions = array<i32: 0>} : vector<8x128xi32>
    %c0_i32 = arith.constant 0 : i32
    %75 = vector.broadcast %c0_i32 : i32 to vector<8x128xi32>
    %76 = arith.cmpi eq, %74, %75 : vector<8x128xi32>
    %c1_i32 = arith.constant 1 : i32
    %77 = vector.broadcast %c1_i32 : i32 to vector<8x128xi32>
    %78 = arith.cmpi eq, %74, %77 : vector<8x128xi32>
    %c2_i32 = arith.constant 2 : i32
    %79 = vector.broadcast %c2_i32 : i32 to vector<8x128xi32>
    %80 = arith.cmpi eq, %74, %79 : vector<8x128xi32>
    %cst_21 = arith.constant 0.000000e+00 : f32
    %81 = vector.broadcast %73 : f32 to vector<8x128xf32>
    %82 = vector.broadcast %cst_21 : f32 to vector<8x128xf32>
    %83 = arith.select %80, %81, %82 : vector<8x128xi1>, vector<8x128xf32>
    %84 = vector.broadcast %68 : f32 to vector<8x128xf32>
    %85 = arith.select %78, %84, %83 : vector<8x128xi1>, vector<8x128xf32>
    %86 = vector.broadcast %63 : f32 to vector<8x128xf32>
    %87 = arith.select %76, %86, %85 : vector<8x128xi1>, vector<8x128xf32>
    %88 = vector.shape_cast %87 : vector<8x128xf32> to vector<1x8x128xf32>
    %c0_22 = arith.constant 0 : index
    %c0_23 = arith.constant 0 : index
    %c0_24 = arith.constant 0 : index
    %89 = vector.load %arg4[%c0_22, %c0_23, %c0_24] : memref<1x8x128xf32, #tpu.memory_space<vmem>>, vector<1x8x128xf32>
    tpu.vector_store %arg4[%c0_22, %c0_23, %c0_24], %88 {strides = array<i32>} : memref<1x8x128xf32, #tpu.memory_space<vmem>>, vector<1x8x128xf32>,
    return
  }
  func.func @transform_0(%arg0: i32) -> (i32, i32) {
    %c0_i32 = arith.constant 0 : i32
    %c0_i32_0 = arith.constant 0 : i32
    return %arg0, %c0_i32 : i32, i32
  }
  func.func @transform_1(%arg0: i32) -> (i32, i32) {
    %c0_i32 = arith.constant 0 : i32
    %c0_i32_0 = arith.constant 0 : i32
    return %arg0, %c0_i32 : i32, i32
  }
  func.func @transform_2(%arg0: i32) -> (i32, i32) {
    %c0_i32 = arith.constant 0 : i32
    %c0_i32_0 = arith.constant 0 : i32
    return %arg0, %c0_i32 : i32, i32
  }
  func.func @transform_3(%arg0: i32) -> (i32, i32, i32) {
    %c0_i32 = arith.constant 0 : i32
    %c0_i32_0 = arith.constant 0 : i32
    %c0_i32_1 = arith.constant 0 : i32
    return %arg0, %c0_i32, %c0_i32_0 : i32, i32, i32
  }
}

</mosaic_0001>

<bundles_post_ra>
// kernel: tpu_custom_call.1
= control target key start
LH: loop header
LB: loop body
LE: loop exit
PB: predicated region body
PF: predicated region fallthrough
CT: control target
= control target key end

     0   :  { %8 = vsyncpa [#allocation3], 0  ;;  %s352_s0 = inlined_call_operand.hbm [shape: f32[8,32], index: 0, kind: input, shape index: {}]   ;;  %s353_s1 = inlined_call_operand.hbm [shape: f32[8,32], index: 1, kind: input, shape index: {}]   ;;  %s354_s2 = inlined_call_operand.hbm [shape: f32[8,32], index: 2, kind: input, shape index: {}]   ;;  %s355_s3 = inlined_call_operand.hbm [shape: f32[1,8,128], index: 3, kind: output, shape index: {}]  }
   0x1   :  { %9 = vsyncpa [#allocation6], 0 }
   0x2   :  { %10 = vsyncpa [#allocation4], 0  ;;  %s275_s12 = smov [#allocation5]   ;;  %s276_s14 = smov [#allocation2]  }
   0x3   :  { %s27_s13 = sshll.u32 %s275_s12, 4  ;;  %s17_s15 = sshll.u32 %s276_s14, 4  ;;  %s28_s13 = int_to_ptr.vmem [resolvable:$true] %s27_s13  ;;  %s18_s15 = int_to_ptr.vmem [resolvable:$true] %s17_s15 }
   0x4   :  { %s181_s18 = scalar_lea.hbm %s353_s1, 128 }
   0x5   :  { %p182_p0 = scmp.ne.s32.totalorder %s353_s1, %s181_s18  ;;  %p185_p1 = scmp.lt.u32.totalorder %s181_s18, %s353_s1 }
   0x7   :  { %p187_p2 = pnand %p185_p1, %p182_p0 }
   0x9   :  { %190 = shalt.err (!%p187_p2)
}
   0xa   :  { %s191_s23 = scalar_lea.vmem %s28_s13, 128  ;;  %p196_p4 = scmp.lt.s32.totalorder %s28_s13, %s28_s13 }
   0xb   :  { %p192_p3 = scmp.ne.s32.totalorder %s28_s13, %s191_s23  ;;  %p197_p5 = scmp.lt.s32.totalorder %s191_s23, %s191_s23 }
   0xd   :  { %p198_p6 = por %p197_p5, %p196_p4 }
   0xf   :  { %p199_p7 = pnand %p198_p6, %p192_p3 }
  0x11   :  { %202 = shalt.err (!%p199_p7)
}
  0x12   :  { %30 = dma.hbm_to_vmem [thread:$0]  %s353_s1, 128, %s28_s13, [#allocation6]  }
  0x13   :  { %s203_s28 = scalar_lea.hbm %s352_s0, 128 }
  0x14   :  { %p204_p8 = scmp.ne.s32.totalorder %s352_s0, %s203_s28  ;;  %p207_p9 = scmp.lt.u32.totalorder %s203_s28, %s352_s0 }
  0x16   :  { %p209_p10 = pnand %p207_p9, %p204_p8 }
  0x18   :  { %212 = shalt.err (!%p209_p10)
}
  0x19   :  { %s213_s6 = scalar_lea.vmem %s18_s15, 128  ;;  %p218_p12 = scmp.lt.s32.totalorder %s18_s15, %s18_s15 }
  0x1a   :  { %p214_p11 = scmp.ne.s32.totalorder %s18_s15, %s213_s6  ;;  %p219_p13 = scmp.lt.s32.totalorder %s213_s6, %s213_s6 }
  0x1c   :  { %p220_p0 = por %p219_p13, %p218_p12 }
  0x1e   :  { %p221_p1 = pnand %p220_p0, %p214_p11 }
  0x20   :  { %224 = shalt.err (!%p221_p1)
}
  0x21   :  { %20 = dma.hbm_to_vmem [thread:$0]  %s352_s0, 128, %s18_s15, [#allocation3]  }
  0x22   :  { %s277_s8 = smov [#allocation7]   ;;  %s225_s12 = scalar_lea.hbm %s354_s2, 128 }
  0x23   :  { %s37_s9 = sshll.u32 %s277_s8, 4  ;;  %p226_p2 = scmp.ne.s32.totalorder %s354_s2, %s225_s12  ;;  %s38_s9 = int_to_ptr.vmem [resolvable:$true] %s37_s9 }
  0x24   :  { %p229_p3 = scmp.lt.u32.totalorder %s225_s12, %s354_s2 }
  0x26   :  { %p231_p4 = pnand %p229_p3, %p226_p2 }
  0x28   :  { %234 = shalt.err (!%p231_p4)
}
  0x29   :  { %s235_s18 = scalar_lea.vmem %s38_s9, 128  ;;  %p240_p6 = scmp.lt.s32.totalorder %s38_s9, %s38_s9 }
  0x2a   :  { %p236_p5 = scmp.ne.s32.totalorder %s38_s9, %s235_s18  ;;  %p241_p7 = scmp.lt.s32.totalorder %s235_s18, %s235_s18 }
  0x2c   :  { %p242_p8 = por %p241_p7, %p240_p6 }
  0x2e   :  { %p243_p9 = pnand %p242_p8, %p236_p5 }
  0x30   :  { %246 = shalt.err (!%p243_p9)
}
  0x31   :  { %40 = dma.hbm_to_vmem [thread:$0]  %s354_s2, 128, %s38_s9, [#allocation6]  }
  0x32   :  { %269 = dma.done.wait [#allocation3], 128  }
  0x33   :  { %270 = vsyncadd [#allocation3], 4294967168 }
  0x34   :  { %271 = dma.done.wait [#allocation6], 256  }
  0x35   :  { %272 = vsyncadd [#allocation6], 4294967040  ;;  %v52_v0 = vld [vmem:[#allocation7] sm:$0xff]  ;;  %vm54_vm0 = vcmask 261120   ;;  %v50_v1 = vld [vmem:[#allocation2] sm:$0xff]  ;;  %vm106_vm1 = vcmask 7168  }
  0x36   :  { %v51_v2 = vld [vmem:[#allocation5] sm:$0xff]  ;;  %v62_v3 = vmul.f32 %v52_v0, %v52_v0  ;;  %v53_v4 = vmul.f32 %v50_v1, %v50_v1  ;;  %v70_v11 = vmul.f32 %v52_v0, %v50_v1  ;;  %s278_s21 = smov [#allocation8]  }
  0x37   :  { %v58_v5 = vmul.f32 %v51_v2, %v51_v2  ;;  %v66_v6 = vmul.f32 %v51_v2, %v50_v1  ;;  %s155_s22 = sshll.u32 %s278_s21, 4  ;;  %s156_s22 = int_to_ptr.vmem [resolvable:$true] %s155_s22 }
  0x38   :  { %v63_v7 = vsel %vm54_vm0, %v62_v3, 0.0  ;;  %v55_v8 = vsel %vm54_vm0, %v53_v4, 0.0  ;;  %v71_v12 = vsel %vm54_vm0, %v70_v11, 0.0  ;;  %v100_v3 = vlaneseq  ;;  %s247_s23 = scalar_lea.vmem %s156_s22, 128  ;;  %p252_p11 = scmp.lt.s32.totalorder %s156_s22, %s156_s22 }
  0x39   :  { %64 = vadd.xlane.f32.xlu1 %v63_v7  ;;  %56 = vadd.xlane.f32.xlu0 %v55_v8  ;;  %v59_v9 = vsel %vm54_vm0, %v58_v5, 0.0  ;;  %v67_v10 = vsel %vm54_vm0, %v66_v6, 0.0  ;;  %p248_p10 = scmp.ne.s32.totalorder %s156_s22, %s247_s23  ;;  %p253_p12 = scmp.lt.s32.totalorder %s247_s23, %s247_s23 }
  0x3a   :  { %v101_v4 = vshrl.u32 %v100_v3, 7 }
  0x3b   :  { %p254_p13 = por %p253_p12, %p252_p11 }
  0x3c   :  { %vm141_vm2 = vcmp.eq.s32.totalorder %v101_v4, 2  ;;  %vm140_vm3 = vcmp.eq.s32.totalorder %v101_v4, 1  ;;  %vm139_vm4 = vcmp.eq.s32.totalorder %v101_v4, 0 }
  0x3d   :  { %60 = vadd.xlane.f32.xlu0 %v59_v9  ;;  %68 = vadd.xlane.f32.xlu1 %v67_v10  ;;  %p255_p0 = pnand %p254_p13, %p248_p10 }
  0x41   :  { %72 = vadd.xlane.f32.xlu0 %v71_v12 }
  0xc6   :  { %v65_v13 = vpop.xlane.xlu1 %64  ;;  %v57_v14 = vpop.xlane.xlu0 %56 }
  0xc7   :  { %v78_v15 = vmax.f32 %v65_v13, 1e-24  ;;  %v74_v16 = vmax.f32 %v57_v14, 1e-24 }
  0xc9   :  { %175 = vrsqrt.f32 %v78_v15 }
  0xca   :  { %177 = vrsqrt.f32 %v74_v16  ;;  %v61_v17 = vpop.xlane.xlu0 %60  ;;  %v69_v21 = vpop.xlane.xlu1 %68 }
  0xcb   :  { %v76_v18 = vmax.f32 %v61_v17, 1e-24  ;;  %v85_v27 = vmul.f32 2.0, %v69_v21 }
  0xcd   :  { %179 = vrsqrt.f32 %v76_v18 }
  0xce   :  { %v73_v19 = vpop.xlane.xlu0 %72 }
  0xcf   :  { %v92_v24 = vmul.f32 2.0, %v73_v19 }
  0xd3   :  { %v176_v20 = vpop.eup %175 }
  0xd4   :  { %v178_v22 = vpop.eup %177  ;;  %v89_v23 = vmul.f32 %v176_v20, %v65_v13 }
  0xd5   :  { %v80_v25 = vmul.f32 %v178_v22, %v57_v14  ;;  %v93_v31 = vmul.f32 %v178_v22, %v92_v24  ;;  %v86_v34 = vmul.f32 %v178_v22, %v85_v27 }
  0xd6   :  { %v90_v26 = vmul.f32 %v176_v20, %v89_v23 }
  0xd7   :  { %v180_v28 = vpop.eup %179  ;;  %v81_v29 = vmul.f32 %v178_v22, %v80_v25  ;;  %v94_v35 = vmul.f32 %v176_v20, %v93_v31 }
  0xd8   :  { %v82_v30 = vmul.f32 %v180_v28, %v61_v17  ;;  %v87_v37 = vmul.f32 %v180_v28, %v86_v34 }
  0xd9   :  { %v91_v32 = vadd.f32 %v90_v26, %v81_v29 }
  0xda   :  { %v83_v33 = vmul.f32 %v180_v28, %v82_v30 }
  0xdb   :  { %v95_v39 = vsub.f32 %v91_v32, %v94_v35 }
  0xdc   :  { %v84_v36 = vadd.f32 %v83_v33, %v81_v29 }
  0xdd   :  { %v129_v45 = vsel %vm106_vm1, %v95_v39, 0.0 }
  0xde   :  { %v88_v38 = vsub.f32 %v84_v36, %v87_v37 }
  0xe0   :  { %v118_v40 = vsel %vm106_vm1, %v88_v38, 0.0  ;;  %v96_v41 = vsub.f32 %v88_v38, %v95_v39 }
  0xe1   :  { %119 = vadd.xlane.f32.xlu0 %v118_v40 }
  0xe2   :  { %v97_v42 = vadd.f32 0.3, %v96_v41 }
  0xe4   :  { %v98_v43 = vmax.f32 %v97_v42, 0.0 }
  0xe6   :  { %v107_v44 = vsel %vm106_vm1, %v98_v43, 0.0 }
  0xe7   :  { %108 = vadd.xlane.f32.xlu1 %v107_v44 }
  0xeb   :  { %130 = vadd.xlane.f32.xlu1 %v129_v45 }
 0x16e   :  { %v120_v46 = vpop.xlane.xlu0 %119 }
 0x16f   :  { %v121_v47 = vrot.slane %v120_v46, 4 }
 0x171   :  { %v122_v48 = vadd.f32 %v121_v47, %v120_v46 }
 0x173   :  { %v123_v49 = vrot.slane %v122_v48, 2 }
 0x174   :  { %v109_v50 = vpop.xlane.xlu1 %108 }
 0x175   :  { %v110_v51 = vrot.slane %v109_v50, 4  ;;  %v124_v53 = vadd.f32 %v123_v49, %v122_v48 }
 0x177   :  { %v111_v52 = vadd.f32 %v110_v51, %v109_v50  ;;  %v125_v59 = vrot.slane %v124_v53, 1 }
 0x178   :  { %v131_v54 = vpop.xlane.xlu1 %130 }
 0x179   :  { %v112_v55 = vrot.slane %v111_v52, 2  ;;  %v132_v56 = vrot.slane %v131_v54, 4  ;;  %v126_v0 = vadd.f32 %v125_v59, %v124_v53 }
 0x17b   :  { %v133_v57 = vadd.f32 %v132_v56, %v131_v54  ;;  %v113_v58 = vadd.f32 %v112_v55, %v111_v52 }
 0x17d   :  { %v134_v60 = vrot.slane %v133_v57, 2  ;;  %v114_v61 = vrot.slane %v113_v58, 1 }
 0x17f   :  { %v135_v62 = vadd.f32 %v134_v60, %v133_v57  ;;  %v115_v63 = vadd.f32 %v114_v61, %v113_v58 }
 0x181   :  { %165 = vpush %v115_v63  ;;  %v136_v1 = vrot.slane %v135_v62, 1 }
 0x182   :  { %167 = vpush %v126_v0 }
 0x183   :  { %v137_v2 = vadd.f32 %v136_v1, %v135_v62 }
 0x185   :  { %169 = vpush %v137_v2 }
 0x1b2   :  { %s166_s2 = spop %165 }
 0x1b3   :  { %s168_s19 = spop %167  ;;  %v146_v8 = vstv %s166_s2 }
 0x1b4   :  { %v144_v6 = vstv %s168_s19 }
 0x1b6   :  { %s170_s20 = spop %169 }
 0x1b7   :  { %v142_v5 = vstv %s170_s20 }
 0x1b8   :  { %v143_v7 = vsel %vm141_vm2, %v142_v5, 0.0 }
 0x1b9   :  { %v145_v9 = vsel %vm140_vm3, %v144_v6, %v143_v7 }
 0x1ba   :  { %v147_v10 = vsel %vm139_vm4, %v146_v8, %v145_v9 }
 0x1bb   :  { %148 = vst [vmem:[#allocation8] sm:$0xff] %v147_v10 }
 0x1bc   :  { %258 = shalt.err (!%p255_p0)
}
 0x1bd   :  { %s259_s26 = scalar_lea.hbm %s355_s3, 128 }
 0x1be   :  { %p260_p1 = scmp.ne.s32.totalorder %s355_s3, %s259_s26  ;;  %p263_p2 = scmp.lt.u32.totalorder %s259_s26, %s355_s3 }
 0x1c0   :  { %p265_p3 = pnand %p263_p2, %p260_p1 }
 0x1c2   :  { %268 = shalt.err (!%p265_p3)
}
 0x1c3   :  { %158 = dma.vmem_to_hbm [thread:$0]  %s156_s22, 128, %s355_s3, [#allocation4]  }
 0x1c4   :  { %273 = dma.done.wait [#allocation4], 128  }
 0x1c5   :  { %274 = vsyncadd [#allocation4], 4294967168 }
 0x1c6   :  { %162 = vsyncpa [#allocation3], 1 }
 0x1c7   :  { %163 = vsyncpa [#allocation6], 1 }
 0x1c8   :  { %164 = vsyncpa [#allocation4], 1 }

</bundles_post_ra>
